<compile_context>
chip_gen: v6e
topology: v6e:2x2x1
jax: 0.10.0
libtpu: 0.0.40
codegen_flags: <defaults>
</compile_context>

<pallas_src>
import jax
import jax.numpy as jnp
from jax.experimental import pallas as pl
from jax.experimental.pallas import tpu as pltpu

EPS = 1e-5


# ----------------------------- latency path (tiny B) -----------------------------

def alzheimer_kernel(x_ref, w1_ref, b1_ref, w3_ref, bias3_ref, out_ref):
    # fc1 (norm0 pre-folded): bf16 MXU matmul, f32 accumulate; epilogue in f32.
    h = jnp.dot(x_ref[...], w1_ref[...], preferred_element_type=jnp.float32)
    h = jnp.maximum(h + b1_ref[...], 0.0)                       # (B, Hp) f32
    # fc3 (norm2 pre-folded), output width 1: at tiny B an N=1 MXU matmul is
    # maximally lane sparse, so use a VPU multiply + XLU lane reduction.
    o = jnp.sum(h * w3_ref[...].astype(jnp.float32), axis=-1, keepdims=True)
    out_ref[...] = jax.nn.sigmoid(o + bias3_ref[0])             # bias3: SMEM scalar


def alzheimer_forward(x, fused):
    """Tiny-batch / latency path: single grid-less, fully VMEM-resident call."""
    B, IN = x.shape
    Hp = fused["w1"].shape[1]
    vmem = pl.BlockSpec(memory_space=pltpu.MemorySpace.VMEM)
    smem = pl.BlockSpec(memory_space=pltpu.MemorySpace.SMEM)
    return pl.pallas_call(
        alzheimer_kernel,
        out_shape=jax.ShapeDtypeStruct((B, 1), jnp.float32),
        in_specs=[vmem, vmem, vmem, vmem, smem],
        out_specs=vmem,
        cost_estimate=pl.CostEstimate(
            flops=2 * B * IN * Hp + 4 * B * Hp,
            transcendentals=B,
            bytes_accessed=2 * (B * IN + IN * Hp + Hp) + 4 * (Hp + B + 1),
        ),
    )(x.astype(jnp.bfloat16), fused["w1"], fused["b1"], fused["w3"],
      fused["bias3"])


# ----------------------------- serving path (large B) -----------------------------

def alzheimer_serving_kernel(x_ref, w1_ref, w3_ref, bias3_ref, out_ref):
    # fc1 with b1 folded in via the appended ones column: MXU, f32 accumulate.
    h = jnp.dot(x_ref[...], w1_ref[...], preferred_element_type=jnp.float32)
    h = jnp.maximum(h, 0.0).astype(jnp.bfloat16)                # relu in f32, cast for MXU
    # fc3 on the MXU (it is nearly idle: fc1 has K=33), produced directly in
    # lane-dense (1, TILE_B) orientation:  (1, Hp) . (TILE_B, Hp)^T.
    o = jax.lax.dot_general(
        w3_ref[...], h,
        dimension_numbers=(((1,), (1,)), ((), ())),
        preferred_element_type=jnp.float32)                     # (1, TILE_B)
    out_ref[...] = jax.nn.sigmoid(o + bias3_ref[0])


def alzheimer_forward_serving(x, fused, tile_b=128):
    """Large-batch path: 1-D 'parallel' batch grid with VMEM-resident weights.

    tile_b=128 matches the v5e MXU height; use 256 on v6e/v7x (2x256x256 MXU).
    Even at tile_b=1024 the resident set (<0.5 MB) is far under the scoped
    VMEM default on v5e/v6e/v7x, so no vmem_limit_bytes override is needed.
    """
    B, _ = x.shape
    Ka, Hp = fused["w1_aug"].shape                  # Ka = input_size + 1
    Bp = ((B + tile_b - 1) // tile_b) * tile_b
    x_aug = jnp.concatenate(
        [x, jnp.ones((B, 1), x.dtype)], axis=1).astype(jnp.bfloat16)
    if Bp != B:
        x_aug = jnp.pad(x_aug, ((0, Bp - B), (0, 0)))
    out = pl.pallas_call(
        alzheimer_serving_kernel,
        out_shape=jax.ShapeDtypeStruct((1, Bp), jnp.float32),
        grid=(Bp // tile_b,),
        in_specs=[
            pl.BlockSpec((tile_b, Ka), lambda i: (i, 0)),  # x tile per step
            pl.BlockSpec((Ka, Hp), lambda i: (0, 0)),      # weights DMA'd once
            pl.BlockSpec((1, Hp), lambda i: (0, 0)),       # (weights resident)
            pl.BlockSpec(memory_space=pltpu.MemorySpace.SMEM),
        ],
        out_specs=pl.BlockSpec((1, tile_b), lambda i: (0, i)),  # lane-dense row
        compiler_params=pltpu.CompilerParams(
            dimension_semantics=("parallel",)),      # second TC on v7x
    )(x_aug, fused["w1_aug"], fused["w3"], fused["bias3"])
    return out[0, :B].reshape(B, 1)


# ----------------------------- parameters -----------------------------

def init_params(key, input_size=32, hidden_size=500):
    """Synthetic parameters matching the PyTorch module's shapes.

    Norm parameters are randomized (they are learnable in the module) so the
    affine fold below is verified non-trivially against the reference.
    """
    ks = jax.random.split(key, 12)
    g0 = 1.0 + 0.1 * jax.random.normal(ks[0], (1, input_size), jnp.float32)
    b0 = 0.1 * jax.random.normal(ks[1], (1, input_size), jnp.float32)
    m0 = 0.1 * jax.random.normal(ks[2], (1, input_size), jnp.float32)
    v0 = 1.0 + 0.2 * jax.random.uniform(ks[3], (1, input_size), jnp.float32)
    w1 = 0.05 * jax.random.normal(ks[4], (input_size, hidden_size), jnp.float32)
    bias1 = 0.05 * jax.random.normal(ks[5], (1, hidden_size), jnp.float32)
    g2 = 1.0 + 0.1 * jax.random.normal(ks[6], (1, hidden_size), jnp.float32)
    b2 = 0.1 * jax.random.normal(ks[7], (1, hidden_size), jnp.float32)
    m2 = 0.1 * jax.random.normal(ks[8], (1, hidden_size), jnp.float32)
    v2 = 1.0 + 0.2 * jax.random.uniform(ks[9], (1, hidden_size), jnp.float32)
    w3 = 0.05 * jax.random.normal(ks[10], (hidden_size, 1), jnp.float32)
    bias3 = 0.05 * jax.random.normal(ks[11], (1, 1), jnp.float32)
    return dict(g0=g0, b0=b0, m0=m0, v0=v0, w1=w1, bias1=bias1,
                g2=g2, b2=b2, m2=m2, v2=v2, w3=w3, bias3=bias3)


def fold_params(p, lane=128, mxu_dtype=jnp.bfloat16):
    """Fold norm0/norm2 into fc1/fc3, pad hidden 500->512, cast MXU operands.

    Done once at parameter-prep time (NOT per forward call).  Padded hidden
    columns are zero, so relu(0)=0 and they contribute nothing downstream.
    """
    H = p["w1"].shape[1]
    # norm0 as affine: xn = x*s0 + t0
    s0 = p["g0"] / jnp.sqrt(p["v0"] + EPS)            # (1, IN)
    t0 = p["b0"] - p["m0"] * s0                       # (1, IN)
    w1f = p["w1"] * s0.T                              # (IN, H)  row-scaled
    b1f = t0 @ p["w1"] + p["bias1"]                   # (1, H)
    # norm2 as affine: hn = h*s2 + t2
    s2 = p["g2"] / jnp.sqrt(p["v2"] + EPS)            # (1, H)
    t2 = p["b2"] - p["m2"] * s2                       # (1, H)
    w3row = p["w3"].T * s2                            # (1, H)  lane-dense row
    bias3f = (t2 @ p["w3"] + p["bias3"]).reshape(1)   # (1,)    scalar

    Hp = ((H + lane - 1) // lane) * lane
    pad = Hp - H
    if pad:
        w1f = jnp.pad(w1f, ((0, 0), (0, pad)))
        b1f = jnp.pad(b1f, ((0, 0), (0, pad)))
        w3row = jnp.pad(w3row, ((0, 0), (0, pad)))
    # Serving path: fold b1 into the fc1 matmul (x gets an appended ones column).
    w1_aug = jnp.concatenate([w1f, b1f], axis=0)      # (IN+1, Hp)
    return dict(
        w1=w1f.astype(mxu_dtype),            # (IN, Hp)   bf16 MXU operand
        b1=b1f.astype(jnp.float32),          # (1, Hp)    f32 epilogue bias
        w3=w3row.astype(mxu_dtype),          # (1, Hp)    bf16 operand
        bias3=bias3f.astype(jnp.float32),    # (1,)       f32 SMEM scalar
        w1_aug=w1_aug.astype(mxu_dtype),     # (IN+1, Hp) bf16, bias row appended
    )


def reference_forward(x, p):
    """Pure-JAX f32 reference of the original (unfolded) module forward."""
    xn = (x - p["m0"]) / jnp.sqrt(p["v0"] + EPS) * p["g0"] + p["b0"]
    h = jnp.maximum(xn @ p["w1"] + p["bias1"], 0.0)
    hn = (h - p["m2"]) / jnp.sqrt(p["v2"] + EPS) * p["g2"] + p["b2"]
    return jax.nn.sigmoid(hn @ p["w3"] + p["bias3"])


if __name__ == "__main__":
    INPUT_SIZE, HIDDEN_SIZE = 32, 500          # module default feature dims
    key = jax.random.PRNGKey(0)
    kx, kxs, kp = jax.random.split(key, 3)

    params = init_params(kp, INPUT_SIZE, HIDDEN_SIZE)
    fused = fold_params(params)                # one-time prep (not per call)

    # Latency path (tiny batch): grid-less fused call.
    B = 8
    x = jax.random.normal(kx, (B, INPUT_SIZE), jnp.float32)
    out = jax.block_until_ready(alzheimer_forward(x, fused))
    ref = reference_forward(x, params)
    assert out.shape == (B, 1)
    assert jnp.allclose(out, ref, atol=2e-2), (      # bf16 MXU operands
        float(jnp.max(jnp.abs(out - ref))))

    # Serving path: 1-D parallel batch grid; non-multiple B exercises padding.
    Bs = 200
    xs = jax.random.normal(kxs, (Bs, INPUT_SIZE), jnp.float32)
    outs = jax.block_until_ready(alzheimer_forward_serving(xs, fused, tile_b=128))
    refs = reference_forward(xs, params)
    assert outs.shape == (Bs, 1)
    assert jnp.allclose(outs, refs, atol=2e-2), (
        float(jnp.max(jnp.abs(outs - refs))))

    print("KERNEL_OK")
</pallas_src>

<mosaic_0001>
module attributes {stable_mosaic.version = 11 : i64} {
  func.func @alzheimer_kernel(%arg0: memref<8x32xbf16, #tpu.memory_space<vmem>>, %arg1: memref<32x512xbf16, #tpu.memory_space<vmem>>, %arg2: memref<1x512xf32, #tpu.memory_space<vmem>>, %arg3: memref<1x512xbf16, #tpu.memory_space<vmem>>, %arg4: memref<1xf32, #tpu.memory_space<smem>>, %arg5: memref<8x1xf32, #tpu.memory_space<vmem>>) attributes {dimension_semantics = [], scalar_prefetch = 0 : i64, scratch_operands = 0 : i64, tpu.core_type = #tpu.core_type<tc>} {
    %c0 = arith.constant 0 : index
    %c0_0 = arith.constant 0 : index
    %0 = vector.load %arg0[%c0, %c0_0] : memref<8x32xbf16, #tpu.memory_space<vmem>>, vector<8x32xbf16>
    %c0_1 = arith.constant 0 : index
    %c0_2 = arith.constant 0 : index
    %1 = vector.load %arg1[%c0_1, %c0_2] : memref<32x512xbf16, #tpu.memory_space<vmem>>, vector<32x512xbf16>
    %cst = arith.constant dense<0.000000e+00> : vector<8x512xf32>
    %2 = tpu.matmul %0, %1, %cst {dimension_numbers = #tpu.dot_dimension_numbers<[1], [0], [0], [1], [0, 0, 1, 1], [], []>} : vector<8x32xbf16>, vector<32x512xbf16>, vector<8x512xf32> -> vector<8x512xf32>
    %c0_3 = arith.constant 0 : index
    %c0_4 = arith.constant 0 : index
    %3 = vector.load %arg2[%c0_3, %c0_4] : memref<1x512xf32, #tpu.memory_space<vmem>>, vector<1x512xf32>
    %4 = vector.broadcast %3 : vector<1x512xf32> to vector<8x512xf32>
    %5 = arith.addf %2, %4 : vector<8x512xf32>
    %cst_5 = arith.constant 0.000000e+00 : f32
    %6 = vector.broadcast %cst_5 : f32 to vector<8x512xf32>
    %7 = arith.maximumf %5, %6 : vector<8x512xf32>
    %c0_6 = arith.constant 0 : index
    %c0_7 = arith.constant 0 : index
    %8 = vector.load %arg3[%c0_6, %c0_7] : memref<1x512xbf16, #tpu.memory_space<vmem>>, vector<1x512xbf16>
    %9 = arith.extf %8 : vector<1x512xbf16> to vector<1x512xf32>
    %10 = vector.broadcast %9 : vector<1x512xf32> to vector<8x512xf32>
    %11 = arith.mulf %7, %10 : vector<8x512xf32>
    %cst_8 = arith.constant dense<0.000000e+00> : vector<8xf32>
    %12 = vector.multi_reduction <add>, %11, %cst_8 [1] : vector<8x512xf32> to vector<8xf32>
    %13 = vector.shape_cast %12 : vector<8xf32> to vector<8x1xf32>
    %c0_9 = arith.constant 0 : index
    %14 = memref.load %arg4[%c0_9] : memref<1xf32, #tpu.memory_space<smem>>
    %15 = vector.broadcast %14 : f32 to vector<8x1xf32>
    %16 = arith.addf %13, %15 : vector<8x1xf32>
    %17 = arith.negf %16 : vector<8x1xf32>
    %18 = math.exp %17 : vector<8x1xf32>
    %cst_10 = arith.constant 1.000000e+00 : f32
    %19 = vector.broadcast %cst_10 : f32 to vector<8x1xf32>
    %20 = arith.addf %19, %18 : vector<8x1xf32>
    %21 = arith.divf %19, %20 : vector<8x1xf32>
    %c0_11 = arith.constant 0 : index
    %c0_12 = arith.constant 0 : index
    %22 = vector.load %arg5[%c0_11, %c0_12] : memref<8x1xf32, #tpu.memory_space<vmem>>, vector<8x1xf32>
    tpu.vector_store %arg5[%c0_11, %c0_12], %21 {strides = array<i32>} : memref<8x1xf32, #tpu.memory_space<vmem>>, vector<8x1xf32>,
    return
  }
}

</mosaic_0001>

<bundles_post_ra>
// kernel: tpu_custom_call.1
= control target key start
LH: loop header
LB: loop body
LE: loop exit
PB: predicated region body
PF: predicated region fallthrough
CT: control target
= control target key end

     0   :  { %11 = vsyncpa [#allocation4], 0  ;;  %s436_s0 = inlined_call_operand.hbm [shape: bf16[8,32], index: 0, kind: input, shape index: {}]   ;;  %s437_s1 = inlined_call_operand.hbm [shape: bf16[32,512], index: 1, kind: input, shape index: {}]   ;;  %s438_s2 = inlined_call_operand.vmem [shape: f32[1,512], index: 2, kind: input, shape index: {}]   ;;  %s439_s3 = inlined_call_operand.hbm [shape: bf16[1,512], index: 3, kind: input, shape index: {}]   ;;  %s440_s4 = inlined_call_operand.<no memory space> [shape: f32[1], index: 4, kind: input, shape index: {}]   ;;  %s441_s5 = inlined_call_operand.vmem [shape: f32[8,1], index: 5, kind: output, shape index: {}]  }
   0x1   :  { %12 = vsyncpa [#allocation6], 0  ;;  %s382_s18 = smov [#allocation5]  }
   0x2   :  { %s28_s19 = sshll.u32 %s382_s18, 4  ;;  %s29_s19 = int_to_ptr.vmem [resolvable:$true] %s28_s19 }
   0x3   :  { %s326_s20 = scalar_lea.vmem %s29_s19, 1024  ;;  %p331_p1 = scmp.lt.s32.totalorder %s29_s19, %s29_s19 }
   0x4   :  { %p327_p0 = scmp.ne.s32.totalorder %s29_s19, %s326_s20  ;;  %p332_p2 = scmp.lt.s32.totalorder %s326_s20, %s326_s20 }
   0x6   :  { %p333_p3 = por %p332_p2, %p331_p1 }
   0x8   :  { %p334_p4 = pnand %p333_p3, %p327_p0 }
   0xa   :  { %337 = shalt.err (!%p334_p4)
}
   0xb   :  { %s383_s21 = smov 256   ;;  %s384_s22 = smov 16  }
   0xc   :  { %34 = dma.hbm_to_vmem [thread:$0]  %s437_s1, 1024, %s29_s19, [#allocation6], %s383_s21, %s383_s21, %s384_s22  }
   0xd   :  { %s385_s25 = smov [#allocation3]   ;;  %s386_s27 = smov [#allocation7]  }
   0xe   :  { %s19_s26 = sshll.u32 %s385_s25, 4  ;;  %s43_s28 = sshll.u32 %s386_s27, 4  ;;  %s20_s26 = int_to_ptr.vmem [resolvable:$true] %s19_s26  ;;  %s44_s28 = int_to_ptr.vmem [resolvable:$true] %s43_s28 }
   0xf   :  { %s346_s29 = scalar_lea.vmem %s20_s26, 64  ;;  %p351_p6 = scmp.lt.s32.totalorder %s20_s26, %s20_s26 }
  0x10   :  { %p347_p5 = scmp.ne.s32.totalorder %s20_s26, %s346_s29  ;;  %p352_p7 = scmp.lt.s32.totalorder %s346_s29, %s346_s29 }
  0x12   :  { %p353_p8 = por %p352_p7, %p351_p6 }
  0x14   :  { %p354_p9 = pnand %p353_p8, %p347_p5 }
  0x16   :  { %357 = shalt.err (!%p354_p9)
}
  0x17   :  { %22 = dma.hbm_to_vmem [thread:$0]  %s436_s0, 64, %s20_s26, [#allocation4]  }
  0x18   :  { %s366_s7 = scalar_lea.vmem %s44_s28, 64  ;;  %p371_p11 = scmp.lt.s32.totalorder %s44_s28, %s44_s28 }
  0x19   :  { %p367_p10 = scmp.ne.s32.totalorder %s44_s28, %s366_s7  ;;  %p372_p12 = scmp.lt.s32.totalorder %s366_s7, %s366_s7 }
  0x1b   :  { %p373_p13 = por %p372_p12, %p371_p11 }
  0x1d   :  { %p374_p0 = pnand %p373_p13, %p367_p10 }
  0x1f   :  { %377 = shalt.err (!%p374_p0)
}
  0x20   :  { %46 = dma.hbm_to_vmem [thread:$0]  %s439_s3, 64, %s44_s28, [#allocation6]  }
  0x21   :  { %378 = dma.done.wait [#allocation4], 64  }
  0x22   :  { %379 = vsyncadd [#allocation4], 4294967232 }
  0x23   :  { %380 = dma.done.wait [#allocation6], 1088  }
  0x24   :  { %381 = vsyncadd [#allocation6], 4294966208  ;;  %v387_v0 = vmov 0   ;;  %v302_v1 = vld [vmem:[#allocation5 + $0x24] ss:$16 sps:$4 sm:$0xff]   ;;  %vm130_vm0 = vcmask 261120   ;;  %v70_v10 = vlaneseq  ;;  %v269_v56 = vstv %s440_s4 }
  0x25   :  { %166 = vmatprep.mubr.bf16.mxu0 %v387_v0  ;;  %207 = vmatprep.mubr.bf16.mxu1 %v387_v0  ;;  %v304_v2 = vld [vmem:[#allocation5 + $0x2c] ss:$16 sps:$4 sm:$0xff]   ;;  %v306_v3 = vld [vmem:[#allocation5 + $0x20] ss:$16 sps:$4 sm:$0xff]   ;;  %v307_v4 = vld [vmem:[#allocation5 + $0x28] ss:$16 sps:$4 sm:$0xff]  }
  0x26   :  { %146 = vmatprep.subr.bf16.mxu0 %v302_v1  ;;  %187 = vmatprep.subr.bf16.mxu1 %v304_v2  ;;  %v308_v5 = vld [vmem:[#allocation5 + $0x4] ss:$16 sps:$4 sm:$0xff]   ;;  %v310_v6 = vld [vmem:[#allocation5 + $0xc] ss:$16 sps:$4 sm:$0xff]   ;;  %v312_v7 = vld [vmem:[#allocation5] ss:$16 sps:$4 sm:$0xff]  }
  0x27   :  { %147 = vmatpush1.bf16.msra.mxu0 %v306_v3  ;;  %188 = vmatpush1.bf16.msra.mxu1 %v307_v4  ;;  %v313_v8 = vld [vmem:[#allocation5 + $0x8] ss:$16 sps:$4 sm:$0xff]   ;;  %v59_v9 = vld [vmem:[#allocation3] sm:$0xf]  ;;  %v71_v11 = vshrl.u32 %v70_v10, 7  ;;  %vm277_vm1 = vcmask 7168  }
  0x28   :  { %148 = vmatprep.subr.bf16.mxu0 %v308_v5  ;;  %189 = vmatprep.subr.bf16.mxu1 %v310_v6  ;;  %v220_v12 = vld [vmem:[#allocation7] sm:$0xf]  ;;  %v68_v15 = vld [vmem:[%s438_s2] sm:$0xf] }
  0x29   :  { %v72_v13 = vsub.s32 0, %v71_v11  ;;  %v80_v14 = vsub.s32 2, %v71_v11  ;;  %v221_v16 = vunpack.c.l.bf16 %v220_v12  ;;  %v233_v17 = vsub.s32 4, %v71_v11 }
  0x2a   :  { %v76_v18 = vsub.s32 1, %v71_v11  ;;  %v84_v19 = vsub.s32 3, %v71_v11  ;;  %v237_v25 = vsub.s32 6, %v71_v11 }
  0x2b   :  { %149 = vmatpush1.bf16.msra.mxu0 %v312_v7  ;;  %190 = vmatpush1.bf16.msra.mxu1 %v313_v8  ;;  %v73_v20 = vrot.slane %v68_v15, %v72_v13  ;;  %v81_v21 = vrot.slane %v68_v15, %v80_v14  ;;  %v226_v22 = vrot.slane %v221_v16, %v72_v13 }
  0x2c   :  { %v230_v23 = vrot.slane %v221_v16, %v80_v14  ;;  %v234_v24 = vrot.slane %v221_v16, %v233_v17  ;;  %v77_v26 = vrot.slane %v68_v15, %v76_v18  ;;  %v85_v27 = vrot.slane %v68_v15, %v84_v19 }
  0x2d   :  { %v246_v32 = vrot.slane %v226_v22, %v72_v13  ;;  %v238_v37 = vrot.slane %v221_v16, %v237_v25 }
  0x2e   :  { %293 = vmatmul.mubr.msk.bf16.vlgmr.msra.gmra.mxu0 %vm130_vm0, %v59_v9  ;;  %294 = vmatmul.mubr.msk.bf16.vlgmr.msra.gmra.mxu1 %vm130_vm0, %v59_v9  ;;  %v254_v33 = vrot.slane %v234_v24, %v72_v13  ;;  %v250_v35 = vrot.slane %v230_v23, %v72_v13 }
  0x2f   :  { %v258_v47 = vrot.slane %v238_v37, %v72_v13 }
  0xee   :  { %v168_v28 = vpop.f32.mrf.mxu0  ;;  %v209_v29 = vpop.f32.mrf.mxu1 }
  0xef   :  { %v169_v30 = vadd.f32 %v168_v28, %v73_v20  ;;  %v210_v31 = vadd.f32 %v209_v29, %v81_v21 }
  0xf0   :  { %v170_v34 = vpop.f32.mrf.mxu0  ;;  %v211_v36 = vpop.f32.mrf.mxu1 }
  0xf1   :  { %v216_v38 = vmax.f32 %v169_v30, 0.0  ;;  %v218_v39 = vmax.f32 %v210_v31, 0.0  ;;  %v171_v40 = vadd.f32 %v170_v34, %v77_v26  ;;  %v212_v41 = vadd.f32 %v211_v36, %v85_v27 }
  0xf2   :  { %v172_v42 = vpop.f32.mrf.mxu0  ;;  %v213_v43 = vpop.f32.mrf.mxu1 }
  0xf3   :  { %v217_v44 = vmax.f32 %v171_v40, 0.0  ;;  %v259_v48 = vmul.f32 %v246_v32, %v216_v38  ;;  %v261_v49 = vmul.f32 %v254_v33, %v218_v39  ;;  %v219_v51 = vmax.f32 %v212_v41, 0.0 }
  0xf4   :  { %v173_v45 = vpop.f32.mrf.mxu0  ;;  %v214_v46 = vpop.f32.mrf.mxu1 }
  0xf5   :  { %v260_v50 = vmul.f32 %v250_v35, %v217_v44  ;;  %v262_v53 = vmul.f32 %v258_v47, %v219_v51 }
  0xf7   :  { %v263_v52 = vadd.f32 %v260_v50, %v259_v48 }
  0xf9   :  { %v264_v54 = vadd.f32 %v263_v52, %v261_v49 }
  0xfb   :  { %v265_v55 = vadd.f32 %v264_v54, %v262_v53 }
  0xfd   :  { %266 = vadd.xlane.f32.xlu0 %v265_v55 }
 0x186   :  { %v267_v57 = vpop.xlane.xlu0 %266 }
 0x187   :  { %v270_v58 = vadd.f32 %v269_v56, %v267_v57 }
 0x189   :  { %v295_v59 = vmul.f32 -1.442695, %v270_v58 }
 0x18b   :  { %314 = vpow2.f32 %v295_v59 }
 0x198   :  { %v315_v60 = vpop.eup %314 }
 0x199   :  { %v274_v61 = vadd.f32 1.0, %v315_v60 }
 0x19b   :  { %316 = vrcp.f32 %v274_v61 }
 0x1a8   :  { %v317_v62 = vpop.eup %316 }
 0x1a9   :  { %278 = vst.msk [vmem:[%s441_s5] sm:$0xff] %vm277_vm1, %v317_v62 }
 0x1aa   :  { %283 = vsyncpa [#allocation4], 1 }
 0x1ab   :  { %284 = vsyncpa [#allocation6], 1 }

</bundles_post_ra>
